<compile_context>
chip_gen: v7x
topology: tpu7x:2x2x1
jax: 0.10.0
libtpu: 0.0.40
codegen_flags: <defaults>
</compile_context>

<pallas_src>
import functools

import jax
import jax.numpy as jnp
from jax.experimental import pallas as pl
from jax.experimental.pallas import tpu as pltpu

LANE = 128  # lane-dense packed-output width (>= 1 + action_num)


def _policy_net_kernel(x_ref, wfc_ref, bfc_ref, wh_ref, bh_ref, out_ref, *,
                       action_num):
    # x: (TB, S); wfc: (S, H); bfc: (1, H)
    # wh: (H, LANE) fused heads [state | action logits | zero pad]
    # bh: (1, LANE) fused biases; out: (TB, LANE) packed lane-dense output.
    x = x_ref[...]

    # h = relu(x @ Wfc + bfc)   (f32 accumulation, f32 epilogue)
    h = jnp.dot(x, wfc_ref[...], preferred_element_type=jnp.float32) + bfc_ref[...]
    h = jnp.maximum(h, 0.0)

    # Single fused head matmul: one MXU pass produces state value + logits.
    z = (jnp.dot(h.astype(wh_ref.dtype), wh_ref[...],
                 preferred_element_type=jnp.float32) + bh_ref[...])

    # Masked softmax over the action-logit lanes (1 .. action_num), computed
    # on full (TB, 128) vregs so the final store stays lane-dense/unmasked.
    lane = jax.lax.broadcasted_iota(jnp.int32, z.shape, dimension=1)
    is_logit = jnp.logical_and(lane >= 1, lane <= action_num)
    masked = jnp.where(is_logit, z, -jnp.inf)
    m = jnp.max(masked, axis=1, keepdims=True)
    e = jnp.exp(masked - m)                    # padded lanes -> exp(-inf) = 0
    d = jnp.sum(e, axis=1, keepdims=True)
    # EUP approx reciprocal (free slot next to the exp) + one Newton step
    # (two VPU ops on a (TB,1) column) restores ~f32 accuracy.
    r = pl.reciprocal(d, approx=True)
    r = r * (2.0 - d * r)
    p = e * r

    # lane 0 = state value, lanes 1..A = action probs, remaining lanes = 0.
    out_ref[...] = jnp.where(lane == 0, z, p)


def pack_params(params, *, compute_dtype=jnp.float32):
    """One-time parameter prep: fuse the two heads into a lane-dense
    (H, LANE) matrix + (1, LANE) bias and cast matmul operands.

    Do this ONCE (or cache it) — only `x` needs casting per forward call.
    Returns (wfc_mm, bfc, w_heads_mm, b_heads, action_num, compute_dtype).
    """
    wfc, bfc, wa, ba, ws, bs = params
    H = wfc.shape[1]
    A = wa.shape[1]
    assert A + 1 <= LANE, "action_num + 1 must fit in one 128-lane slab"

    w_heads = jnp.zeros((H, LANE), jnp.float32)
    w_heads = w_heads.at[:, 0:1].set(ws).at[:, 1:1 + A].set(wa)
    b_heads = jnp.zeros((1, LANE), jnp.float32)
    b_heads = b_heads.at[:, 0:1].set(bs).at[:, 1:1 + A].set(ba)

    wfc_mm = wfc.astype(compute_dtype)           # MXU operands (f32 or bf16)
    w_heads_mm = w_heads.astype(compute_dtype)
    bfc = bfc.astype(jnp.float32)                # biases stay f32
    b_heads = b_heads.astype(jnp.float32)
    return wfc_mm, bfc, w_heads_mm, b_heads, A, jnp.dtype(compute_dtype)


def _round_up(v, m):
    return ((v + m - 1) // m) * m


def policy_net_forward(x, packed_params, *, block_batch=1024):
    """PolicyNet forward in a single fused Pallas kernel.

    `packed_params` comes from `pack_params` (computed once, reused across
    calls). Returns (state_value (B,1), action_prob (B,A)) in float32.
    """
    wfc_mm, bfc, w_heads_mm, b_heads, A, compute_dtype = packed_params
    B, S = x.shape
    H = wfc_mm.shape[1]

    # Batch tile: single block for tiny B; >= 2 grid steps once B allows it so
    # the "parallel" batch axis can shard across v7x's two TensorCores.
    tb = min(block_batch, max(8, _round_up(pl.cdiv(B, 2), 8)))
    tb = min(tb, _round_up(B, 8))
    grid = (pl.cdiv(B, tb),)

    x_mm = x.astype(compute_dtype)               # only per-call operand cast

    kernel = functools.partial(_policy_net_kernel, action_num=A)

    mm_bytes = jnp.dtype(compute_dtype).itemsize
    cost = pl.CostEstimate(
        flops=2 * B * S * H + 2 * B * H * LANE,
        transcendentals=B * LANE,
        bytes_accessed=(mm_bytes * (B * S + S * H + H * LANE)  # x + resident weights (once)
                        + 4 * (H + LANE)                       # f32 biases (once)
                        + 4 * B * LANE),                       # packed f32 output
    )

    packed = pl.pallas_call(
        kernel,
        out_shape=jax.ShapeDtypeStruct((B, LANE), jnp.float32),
        grid_spec=pltpu.PrefetchScalarGridSpec(
            num_scalar_prefetch=0,
            grid=grid,
            in_specs=[
                pl.BlockSpec((tb, S), lambda i: (i, 0)),       # x: tiled over batch
                pl.BlockSpec((S, H), lambda i: (0, 0)),        # weights stay resident
                pl.BlockSpec((1, H), lambda i: (0, 0)),
                pl.BlockSpec((H, LANE), lambda i: (0, 0)),
                pl.BlockSpec((1, LANE), lambda i: (0, 0)),
            ],
            out_specs=pl.BlockSpec((tb, LANE), lambda i: (i, 0)),
        ),
        compiler_params=pltpu.CompilerParams(
            dimension_semantics=("parallel",)),   # v7x: shard batch over 2 TCs
        cost_estimate=cost,
    )(x_mm, wfc_mm, bfc, w_heads_mm, b_heads)

    state_value = packed[:, 0:1]
    action_prob = packed[:, 1:1 + A]
    return state_value, action_prob


def init_params(key, state_dim, action_num, hidden_dim):
    """Deterministic init mimicking nn.Linear's U(-1/sqrt(fan_in), 1/sqrt(fan_in)).
    Weights are returned already transposed to (in_dim, out_dim)."""
    k = jax.random.split(key, 6)

    def lin(kw, kb, fan_in, fan_out):
        bound = 1.0 / jnp.sqrt(jnp.float32(fan_in))
        w = jax.random.uniform(kw, (fan_in, fan_out), jnp.float32, -bound, bound)
        b = jax.random.uniform(kb, (1, fan_out), jnp.float32, -bound, bound)
        return w, b

    wfc, bfc = lin(k[0], k[1], state_dim, hidden_dim)
    wa, ba = lin(k[2], k[3], hidden_dim, action_num)
    ws, bs = lin(k[4], k[5], hidden_dim, 1)
    return wfc, bfc, wa, ba, ws, bs


def reference_forward(x, params):
    wfc, bfc, wa, ba, ws, bs = params
    h = jnp.maximum(x @ wfc + bfc, 0.0)
    state_value = h @ ws + bs
    logits = h @ wa + ba
    action_prob = jax.nn.softmax(logits, axis=1)
    return state_value, action_prob


if __name__ == "__main__":
    # Small shapes consistent with the module's forward.
    batch, state_dim, action_num, hidden_dim = 8, 16, 4, 32

    key = jax.random.PRNGKey(0)
    kx, kp = jax.random.split(key)
    x = jax.random.normal(kx, (batch, state_dim), jnp.float32)
    params = init_params(kp, state_dim, action_num, hidden_dim)

    # --- f32 matmul-operand path: exact comparison vs pure-JAX reference ---
    packed_f32 = pack_params(params, compute_dtype=jnp.float32)   # one-time prep
    fwd_f32 = jax.jit(lambda xx: policy_net_forward(xx, packed_f32))
    state_value, action_prob = fwd_f32(x)
    jax.block_until_ready((state_value, action_prob))

    sv_ref, ap_ref = reference_forward(x, params)
    assert state_value.shape == (batch, 1)
    assert action_prob.shape == (batch, action_num)
    assert jnp.allclose(state_value, sv_ref, atol=1e-5, rtol=1e-5)
    assert jnp.allclose(action_prob, ap_ref, atol=1e-5, rtol=1e-5)
    assert jnp.allclose(jnp.sum(action_prob, axis=1), 1.0, atol=1e-5)

    # --- bf16 matmul-operand path (MXU fast path on all generations; the
    #     epilogue stays f32, so probabilities still sum to 1 tightly) ------
    packed_bf16 = pack_params(params, compute_dtype=jnp.bfloat16)
    fwd_bf16 = jax.jit(lambda xx: policy_net_forward(xx, packed_bf16))
    sv_bf16, ap_bf16 = fwd_bf16(x)
    jax.block_until_ready((sv_bf16, ap_bf16))
    assert jnp.allclose(sv_bf16, sv_ref, atol=5e-2, rtol=5e-2)
    assert jnp.allclose(ap_bf16, ap_ref, atol=5e-2, rtol=5e-2)
    assert jnp.allclose(jnp.sum(ap_bf16, axis=1), 1.0, atol=1e-5)

    # --- larger batch: exercises the multi-step "parallel" batch grid -------
    big_b = 512
    xb = jax.random.normal(kx, (big_b, state_dim), jnp.float32)
    sv_big, ap_big = policy_net_forward(xb, packed_f32)
    jax.block_until_ready((sv_big, ap_big))
    sv_big_ref, ap_big_ref = reference_forward(xb, params)
    assert sv_big.shape == (big_b, 1) and ap_big.shape == (big_b, action_num)
    assert jnp.allclose(sv_big, sv_big_ref, atol=1e-5, rtol=1e-5)
    assert jnp.allclose(ap_big, ap_big_ref, atol=1e-5, rtol=1e-5)
    assert jnp.allclose(jnp.sum(ap_big, axis=1), 1.0, atol=1e-5)

    print("KERNEL_OK")
</pallas_src>

<mosaic_0001>
module attributes {stable_mosaic.version = 11 : i64} {
  func.func @_policy_net_kernel(%arg0: i32, %arg1: memref<8x16xf32, #tpu.memory_space<vmem>>, %arg2: memref<16x32xf32, #tpu.memory_space<vmem>>, %arg3: memref<1x32xf32, #tpu.memory_space<vmem>>, %arg4: memref<32x128xf32, #tpu.memory_space<vmem>>, %arg5: memref<1x128xf32, #tpu.memory_space<vmem>>, %arg6: memref<8x128xf32, #tpu.memory_space<vmem>>) attributes {dimension_semantics = [#tpu.dimension_semantics<parallel>], iteration_bounds = array<i64: 1>, scalar_prefetch = 0 : i64, scratch_operands = 0 : i64, tpu.core_type = #tpu.core_type<tc>, window_params = [{transform_indices = @transform_0, window_bounds = array<i64: 8, 16>}, {pipeline_mode = #tpu.pipeline_mode<synchronous>, transform_indices = @transform_1, window_bounds = array<i64: 16, 32>}, {pipeline_mode = #tpu.pipeline_mode<synchronous>, transform_indices = @transform_2, window_bounds = array<i64: 1, 32>}, {pipeline_mode = #tpu.pipeline_mode<synchronous>, transform_indices = @transform_3, window_bounds = array<i64: 32, 128>}, {pipeline_mode = #tpu.pipeline_mode<synchronous>, transform_indices = @transform_4, window_bounds = array<i64: 1, 128>}, {transform_indices = @transform_5, window_bounds = array<i64: 8, 128>}]} {
    %c0 = arith.constant 0 : index
    %c0_0 = arith.constant 0 : index
    %0 = vector.load %arg1[%c0, %c0_0] : memref<8x16xf32, #tpu.memory_space<vmem>>, vector<8x16xf32>
    %c0_1 = arith.constant 0 : index
    %c0_2 = arith.constant 0 : index
    %1 = vector.load %arg2[%c0_1, %c0_2] : memref<16x32xf32, #tpu.memory_space<vmem>>, vector<16x32xf32>
    %cst = arith.constant dense<0.000000e+00> : vector<8x32xf32>
    %2 = tpu.matmul %0, %1, %cst {dimension_numbers = #tpu.dot_dimension_numbers<[1], [0], [0], [1], [0, 0, 1, 1], [], []>} : vector<8x16xf32>, vector<16x32xf32>, vector<8x32xf32> -> vector<8x32xf32>
    %c0_3 = arith.constant 0 : index
    %c0_4 = arith.constant 0 : index
    %3 = vector.load %arg3[%c0_3, %c0_4] : memref<1x32xf32, #tpu.memory_space<vmem>>, vector<1x32xf32>
    %4 = vector.broadcast %3 : vector<1x32xf32> to vector<8x32xf32>
    %5 = arith.addf %2, %4 : vector<8x32xf32>
    %cst_5 = arith.constant 0.000000e+00 : f32
    %6 = vector.broadcast %cst_5 : f32 to vector<8x32xf32>
    %7 = arith.maximumf %5, %6 : vector<8x32xf32>
    %c0_6 = arith.constant 0 : index
    %c0_7 = arith.constant 0 : index
    %8 = vector.load %arg4[%c0_6, %c0_7] : memref<32x128xf32, #tpu.memory_space<vmem>>, vector<32x128xf32>
    %cst_8 = arith.constant dense<0.000000e+00> : vector<8x128xf32>
    %9 = tpu.matmul %7, %8, %cst_8 {dimension_numbers = #tpu.dot_dimension_numbers<[1], [0], [0], [1], [0, 0, 1, 1], [], []>} : vector<8x32xf32>, vector<32x128xf32>, vector<8x128xf32> -> vector<8x128xf32>
    %c0_9 = arith.constant 0 : index
    %c0_10 = arith.constant 0 : index
    %10 = vector.load %arg5[%c0_9, %c0_10] : memref<1x128xf32, #tpu.memory_space<vmem>>, vector<1x128xf32>
    %11 = vector.broadcast %10 : vector<1x128xf32> to vector<8x128xf32>
    %12 = arith.addf %9, %11 : vector<8x128xf32>
    %13 = tpu.iota {dimensions = array<i32: 1>} : vector<8x128xi32>
    %c1_i32 = arith.constant 1 : i32
    %14 = vector.broadcast %c1_i32 : i32 to vector<8x128xi32>
    %15 = arith.cmpi sge, %13, %14 : vector<8x128xi32>
    %c4_i32 = arith.constant 4 : i32
    %16 = vector.broadcast %c4_i32 : i32 to vector<8x128xi32>
    %17 = arith.cmpi sle, %13, %16 : vector<8x128xi32>
    %18 = arith.andi %15, %17 : vector<8x128xi1>
    %cst_11 = arith.constant 0xFF800000 : f32
    %19 = vector.broadcast %cst_11 : f32 to vector<8x128xf32>
    %20 = arith.select %18, %12, %19 : vector<8x128xi1>, vector<8x128xf32>
    %cst_12 = arith.constant dense<0xFF800000> : vector<8xf32>
    %21 = vector.multi_reduction <maximumf>, %20, %cst_12 [1] : vector<8x128xf32> to vector<8xf32>
    %22 = vector.shape_cast %21 : vector<8xf32> to vector<8x1xf32>
    %23 = vector.broadcast %22 : vector<8x1xf32> to vector<8x128xf32>
    %24 = arith.subf %20, %23 : vector<8x128xf32>
    %25 = math.exp %24 : vector<8x128xf32>
    %cst_13 = arith.constant dense<0.000000e+00> : vector<8xf32>
    %26 = vector.multi_reduction <add>, %25, %cst_13 [1] : vector<8x128xf32> to vector<8xf32>
    %27 = vector.shape_cast %26 : vector<8xf32> to vector<8x1xf32>
    %28 = tpu.reciprocal %27 {approx = true} : vector<8x1xf32> -> vector<8x1xf32>
    %29 = arith.mulf %27, %28 : vector<8x1xf32>
    %cst_14 = arith.constant 2.000000e+00 : f32
    %30 = vector.broadcast %cst_14 : f32 to vector<8x1xf32>
    %31 = arith.subf %30, %29 : vector<8x1xf32>
    %32 = arith.mulf %28, %31 : vector<8x1xf32>
    %33 = vector.broadcast %32 : vector<8x1xf32> to vector<8x128xf32>
    %34 = arith.mulf %25, %33 : vector<8x128xf32>
    %c0_i32 = arith.constant 0 : i32
    %35 = vector.broadcast %c0_i32 : i32 to vector<8x128xi32>
    %36 = arith.cmpi eq, %13, %35 : vector<8x128xi32>
    %37 = arith.select %36, %12, %34 : vector<8x128xi1>, vector<8x128xf32>
    %c0_15 = arith.constant 0 : index
    %c0_16 = arith.constant 0 : index
    %38 = vector.load %arg6[%c0_15, %c0_16] : memref<8x128xf32, #tpu.memory_space<vmem>>, vector<8x128xf32>
    tpu.vector_store %arg6[%c0_15, %c0_16], %37 {strides = array<i32>} : memref<8x128xf32, #tpu.memory_space<vmem>>, vector<8x128xf32>,
    return
  }
  func.func @transform_0(%arg0: i32) -> (i32, i32) {
    %c0_i32 = arith.constant 0 : i32
    %c0_i32_0 = arith.constant 0 : i32
    return %arg0, %c0_i32 : i32, i32
  }
  func.func @transform_1(%arg0: i32) -> (i32, i32) {
    %c0_i32 = arith.constant 0 : i32
    %c0_i32_0 = arith.constant 0 : i32
    %c0_i32_1 = arith.constant 0 : i32
    return %c0_i32, %c0_i32_0 : i32, i32
  }
  func.func @transform_2(%arg0: i32) -> (i32, i32) {
    %c0_i32 = arith.constant 0 : i32
    %c0_i32_0 = arith.constant 0 : i32
    %c0_i32_1 = arith.constant 0 : i32
    return %c0_i32, %c0_i32_0 : i32, i32
  }
  func.func @transform_3(%arg0: i32) -> (i32, i32) {
    %c0_i32 = arith.constant 0 : i32
    %c0_i32_0 = arith.constant 0 : i32
    %c0_i32_1 = arith.constant 0 : i32
    return %c0_i32, %c0_i32_0 : i32, i32
  }
  func.func @transform_4(%arg0: i32) -> (i32, i32) {
    %c0_i32 = arith.constant 0 : i32
    %c0_i32_0 = arith.constant 0 : i32
    %c0_i32_1 = arith.constant 0 : i32
    return %c0_i32, %c0_i32_0 : i32, i32
  }
  func.func @transform_5(%arg0: i32) -> (i32, i32) {
    %c0_i32 = arith.constant 0 : i32
    %c0_i32_0 = arith.constant 0 : i32
    return %arg0, %c0_i32 : i32, i32
  }
}

</mosaic_0001>

<bundles_post_ra>
// kernel: _lambda_.1
= control target key start
LH: loop header
LB: loop body
LE: loop exit
PB: predicated region body
PF: predicated region fallthrough
CT: control target
= control target key end

     0   :  { %10 = vsyncpa [#allocation3], 0  ;;  %s466_s0 = inlined_call_operand.hbm [shape: f32[8,16], index: 0, kind: input, shape index: {}]   ;;  %s467_s1 = inlined_call_operand.hbm [shape: f32[16,32], index: 1, kind: input, shape index: {}]   ;;  %s468_s2 = inlined_call_operand.vmem [shape: f32[1,32], index: 2, kind: input, shape index: {}]   ;;  %s469_s3 = inlined_call_operand.hbm [shape: f32[32,128], index: 3, kind: input, shape index: {}]   ;;  %s470_s4 = inlined_call_operand.vmem [shape: f32[1,128], index: 4, kind: input, shape index: {}]   ;;  %s471_s5 = inlined_call_operand.vmem [shape: f32[8,128], index: 5, kind: output, shape index: {}]  }
   0x1   :  { %11 = vsyncpa [#allocation5], 0  ;;  %s377_s18 = smov [#allocation4]   ;;  %s307_s22 = scalar_lea.hbm %s467_s1, 256 }
   0x2   :  { %s27_s19 = sshll.u32 %s377_s18, 4  ;;  %p308_p0 = scmp.ne.s32.totalorder %s467_s1, %s307_s22  ;;  %s28_s19 = int_to_ptr.vmem [resolvable:$true] %s27_s19 }
   0x3   :  { %p311_p1 = scmp.lt.u32.totalorder %s307_s22, %s467_s1 }
   0x5   :  { %p313_p2 = pnand %p311_p1, %p308_p0 }
   0x7   :  { %316 = shalt.err (!%p313_p2)
}
   0x8   :  { %s317_s27 = scalar_lea.vmem %s28_s19, 256  ;;  %p322_p4 = scmp.lt.s32.totalorder %s28_s19, %s28_s19 }
   0x9   :  { %p318_p3 = scmp.ne.s32.totalorder %s28_s19, %s317_s27  ;;  %p323_p5 = scmp.lt.s32.totalorder %s317_s27, %s317_s27 }
   0xb   :  { %p324_p6 = por %p323_p5, %p322_p4 }
   0xd   :  { %p325_p7 = pnand %p324_p6, %p318_p3 }
   0xf   :  { %328 = shalt.err (!%p325_p7)
}
  0x10   :  { %s378_s28 = smov 128   ;;  %s379_s29 = smov 8  }
  0x11   :  { %33 = dma.hbm_to_vmem [thread:$0]  %s467_s1, 256, %s28_s19, [#allocation5], %s378_s28, %s378_s28, %s379_s29  }
  0x12   :  { %s380_s7 = smov [#allocation2]   ;;  %s381_s9 = smov [#allocation6]  }
  0x13   :  { %s18_s8 = sshll.u32 %s380_s7, 4  ;;  %s41_s10 = sshll.u32 %s381_s9, 4  ;;  %s19_s8 = int_to_ptr.vmem [resolvable:$true] %s18_s8  ;;  %s42_s10 = int_to_ptr.vmem [resolvable:$true] %s41_s10 }
  0x14   :  { %s329_s13 = scalar_lea.hbm %s466_s0, 128 }
  0x15   :  { %p330_p8 = scmp.ne.s32.totalorder %s466_s0, %s329_s13  ;;  %p333_p9 = scmp.lt.u32.totalorder %s329_s13, %s466_s0 }
  0x17   :  { %p335_p10 = pnand %p333_p9, %p330_p8 }
  0x19   :  { %338 = shalt.err (!%p335_p10)
}
  0x1a   :  { %s339_s1 = scalar_lea.vmem %s19_s8, 128  ;;  %p344_p12 = scmp.lt.s32.totalorder %s19_s8, %s19_s8 }
  0x1b   :  { %p340_p11 = scmp.ne.s32.totalorder %s19_s8, %s339_s1  ;;  %p345_p13 = scmp.lt.s32.totalorder %s339_s1, %s339_s1 }
  0x1d   :  { %p346_p0 = por %p345_p13, %p344_p12 }
  0x1f   :  { %p347_p1 = pnand %p346_p0, %p340_p11 }
  0x21   :  { %350 = shalt.err (!%p347_p1)
}
  0x22   :  { %21 = dma.hbm_to_vmem [thread:$0]  %s466_s0, 128, %s19_s8, [#allocation3]  }
  0x23   :  { %s351_s22 = scalar_lea.hbm %s469_s3, 512 }
  0x24   :  { %p352_p2 = scmp.ne.s32.totalorder %s469_s3, %s351_s22  ;;  %p355_p3 = scmp.lt.u32.totalorder %s351_s22, %s469_s3 }
  0x26   :  { %p357_p4 = pnand %p355_p3, %p352_p2 }
  0x28   :  { %360 = shalt.err (!%p357_p4)
}
  0x29   :  { %s361_s27 = scalar_lea.vmem %s42_s10, 512  ;;  %p366_p6 = scmp.lt.s32.totalorder %s42_s10, %s42_s10 }
  0x2a   :  { %p362_p5 = scmp.ne.s32.totalorder %s42_s10, %s361_s27  ;;  %p367_p7 = scmp.lt.s32.totalorder %s361_s27, %s361_s27 }
  0x2c   :  { %p368_p8 = por %p367_p7, %p366_p6 }
  0x2e   :  { %p369_p9 = pnand %p368_p8, %p362_p5 }
  0x30   :  { %372 = shalt.err (!%p369_p9)
}
  0x31   :  { %47 = dma.hbm_to_vmem [thread:$0]  %s469_s3, 512, %s42_s10, [#allocation5], %s378_s28, %s378_s28, %s379_s29  }
  0x32   :  { %373 = dma.done.wait [#allocation3], 128  }
  0x33   :  { %374 = vsyncadd [#allocation3], 4294967168 }
  0x34   :  { %375 = dma.done.wait [#allocation5], 768  }
  0x35   :  { %376 = vsyncadd [#allocation5], 4294966528  ;;  %v382_v0 = vmov 0.0|0.0   ;;  %vm383_vm0 = vmmov 0   ;;  %v384_v1 = vmov 0.0   ;;  %v60_v2 = vld [vmem:[#allocation4] sm:$0xff]  ;;  %v229_v17 = vlaneseq }
  0x36   :  { %286 = vmatprep.subr.bf16.mxu0 %v382_v0  ;;  %272 = vmatprep.mubr.msk.f32.mxu0 %vm383_vm0, %v384_v1  ;;  %v61_v3 = vld [vmem:[#allocation4 + $0x8] sm:$0xff]  ;;  %v144_v5 = vld [vmem:[#allocation6] sm:$0xff]  ;;  %v145_v6 = vld [vmem:[#allocation6 + $0x8] sm:$0xff]  ;;  %vm69_vm1 = vcmask 130048   ;;  %vm155_vm2 = vcmask 261120  }
  0x37   :  { %289 = vmatprep.subr.bf16.mxu1 %v382_v0  ;;  %283 = vmatprep.mubr.msk.f32.mxu1 %vm383_vm0, %v384_v1  ;;  %v287_v4 = vpack.c.bf16 %v61_v3, %v60_v2  ;;  %v290_v7 = vpack.c.bf16 %v145_v6, %v144_v5  ;;  %v59_v8 = vld [vmem:[#allocation2] sm:$0xff]  ;;  %v146_v9 = vld [vmem:[#allocation6 + $0x10] sm:$0xff]  ;;  %v147_v10 = vld [vmem:[#allocation6 + $0x18] sm:$0xff]  ;;  %v230_v18 = vand.u32 127, %v229_v17 }
  0x38   :  { %v293_v11 = vpack.c.bf16 %v147_v10, %v146_v9  ;;  %v256_v12 = vld [vmem:[%s468_s2] ss:$0 sm:$0xff] }
  0x39   :  { %288 = vmatpush3.bf16.msra.mxu0 %v287_v4  ;;  %291 = vmatpush3.bf16.msra.mxu1 %v290_v7  ;;  %vm231_vm3 = vcmp.ge.s32.totalorder %v230_v18, 1  ;;  %vm232_vm4 = vcmp.le.s32.totalorder %v230_v18, 4  ;;  %v258_v19 = vld [vmem:[%s470_s4] ss:$0 sm:$0xff]  ;;  %vm247_vm6 = vcmp.eq.s32.totalorder %v230_v18, 0 }
  0x3a   :  { %292 = vmatprep.subr.bf16.mxu1 %v382_v0  ;;  %vm233_vm5 = vmand %vm231_vm3, %vm232_vm4 }
  0x3c   :  { %273 = vmatmul.mubr.msk.f32.vlgmr.msra.gmra.mrb[0].mxu0 %vm69_vm1, %v59_v8 }
  0x3d   :  { %294 = vmatpush3.bf16.msra.mxu1 %v293_v11 }
 0x10f   :  { %v139_v13 = vpop.f32.mrb[0].mxu0 }
 0x110   :  { %v140_v14 = vadd.f32 %v256_v12, %v139_v13  ;;  %v274_v15 = vpop.f32.mrb[1].mxu0 }
 0x112   :  { %v143_v16 = vmax.f32 %v140_v14, 0.0 }
 0x114   :  { %284 = vmatmul.mubr.msk.f32.vlgmr.msra.gmra.mrb[0].mxu1 %vm155_vm2, %v143_v16 }
 0x1e7   :  { %v225_v20 = vpop.f32.mrb[0].mxu1 }
 0x1e8   :  { %v226_v21 = vadd.f32 %v258_v19, %v225_v20  ;;  %v285_v22 = vpop.f32.mrb[1].mxu1 }
 0x1ea   :  { %v234_v23 = vsel %vm233_vm5, %v226_v21, -inf }
 0x1eb   :  { %235 = vmax.xlane.f32.xlu0 %v234_v23 }
 0x278   :  { %v236_v24 = vpop.xlane.xlu0 %235 }
 0x279   :  { %v237_v25 = vsub.f32 %v234_v23, %v236_v24 }
 0x27b   :  { %v238_v26 = vmul.f32 1.442695, %v237_v25 }
 0x27d   :  { %303 = vpow2.f32 %v238_v26 }
 0x287   :  { %v304_v27 = vpop.eup %303 }
 0x288   :  { %240 = vadd.xlane.f32.xlu0 %v304_v27 }
 0x315   :  { %v241_v28 = vpop.xlane.xlu0 %240 }
 0x316   :  { %305 = vrcp.f32 %v241_v28 }
 0x320   :  { %v306_v29 = vpop.eup %305 }
 0x321   :  { %v243_v30 = vmul.f32 %v306_v29, %v241_v28 }
 0x323   :  { %v244_v31 = vsub.f32 2.0, %v243_v30 }
 0x325   :  { %v245_v32 = vmul.f32 %v306_v29, %v244_v31 }
 0x327   :  { %v246_v33 = vmul.f32 %v304_v27, %v245_v32 }
 0x329   :  { %v248_v34 = vsel %vm247_vm6, %v226_v21, %v246_v33 }
 0x32a   :  { %249 = vst [vmem:[%s471_s5] sm:$0xff] %v248_v34 }
 0x32b   :  { %254 = vsyncpa [#allocation3], 1 }
 0x32c   :  { %255 = vsyncpa [#allocation5], 1 }

</bundles_post_ra>
